<compile_context>
chip_gen: v7x
topology: tpu7x:2x2x1
jax: 0.10.0
libtpu: 0.0.40
codegen_flags: <defaults>
</compile_context>

<pallas_src>
import numpy as np
import jax
import jax.numpy as jnp
from jax.experimental import pallas as pl
from jax.experimental.pallas import tpu as pltpu


# ----------------------------------------------------------------------------
# Host-side constant-table construction (mirrors the original numpy code)
# ----------------------------------------------------------------------------
def generate_anchors_np(base_size=16, ratios=None, scales=None, angles=None):
    if ratios is None:
        ratios = np.array([0.5, 1, 2])
    if scales is None:
        scales = np.array([2 ** 0, 2 ** (1.0 / 3.0), 2 ** (2.0 / 3.0)])
    if angles is None:
        angles = np.array([-90, -60, -30])
    num_anchors = len(ratios) * len(scales) * len(angles)
    anchors = np.zeros((num_anchors, 4))
    thetas = np.zeros((num_anchors, 1))
    thetas[:, 0] = np.tile(angles, (len(scales), len(ratios))).T.reshape(-1)
    anchors[:, 2:] = base_size * np.tile(scales, (2, len(ratios) * len(angles))).T
    areas = anchors[:, 2] * anchors[:, 3]
    anchors[:, 2] = np.sqrt(areas / np.repeat(ratios, len(scales) * len(angles)))
    anchors[:, 3] = anchors[:, 2] * np.repeat(ratios, len(scales) * len(angles))
    anchors[:, 0::2] -= np.tile(anchors[:, 2] * 0.5, (2, 1)).T
    anchors[:, 1::2] -= np.tile(anchors[:, 3] * 0.5, (2, 1)).T
    anchors = np.hstack((anchors, thetas))
    return anchors


def _xyxy_to_xywh_np(a):
    # TODO(synk): xyxy_to_xywh is not defined in the provided source; the
    # standard (cx, cy, w, h, theta) conversion is assumed here (and used by
    # the reference below).  This conversion is linear and commutes with the
    # per-location shift, which is why it can be baked into the base table.
    out = a.copy()
    out[:, 0] = (a[:, 0] + a[:, 2]) * 0.5
    out[:, 1] = (a[:, 1] + a[:, 3]) * 0.5
    out[:, 2] = a[:, 2] - a[:, 0]
    out[:, 3] = a[:, 3] - a[:, 1]
    return out


def _round_up(x, m):
    return -(-x // m) * m


# ----------------------------------------------------------------------------
# Pallas kernel: out[k, j] = sum_c coeff[k, c] * table[c, j]
# ----------------------------------------------------------------------------
def _anchor_kernel(coeff_ref, table_ref, out_ref):
    # coeff_ref : (TILE_K, C)  per-row coefficients [level one-hot..., sx, sy]
    # table_ref : (C, A*5)     rows = [xywh base anchors per level, mask_x, mask_y]
    # out_ref   : (TILE_K, A*5) row-major anchors for this tile
    num_c = coeff_ref.shape[1]
    acc = coeff_ref[:, 0:1] * table_ref[0:1, :]
    for c in range(1, num_c):                     # static unroll, C = L + 2 (=7)
        acc = acc + coeff_ref[:, c:c + 1] * table_ref[c:c + 1, :]
    out_ref[...] = acc


def _anchor_pallas(coeff, table, *, tile_k):
    k_total, num_c = coeff.shape
    a5 = table.shape[1]
    n_tiles = pl.cdiv(k_total, tile_k)            # last tile clipped by Pallas
    return pl.pallas_call(
        _anchor_kernel,
        grid=(n_tiles,),
        in_specs=[
            pl.BlockSpec((tile_k, num_c), lambda i: (i, 0)),
            pl.BlockSpec((num_c, a5), lambda i: (0, 0)),   # tiny, VMEM-resident
        ],
        out_specs=pl.BlockSpec((tile_k, a5), lambda i: (i, 0)),
        out_shape=jax.ShapeDtypeStruct((k_total, a5), jnp.float32),
        compiler_params=pltpu.CompilerParams(
            dimension_semantics=("parallel",)),
    )(coeff, table)


# ----------------------------------------------------------------------------
# Module-equivalent forward
# ----------------------------------------------------------------------------
def anchors_forward(batch_imgs,
                    pyramid_levels=(3, 4, 5, 6, 7),
                    strides=None, sizes=None,
                    ratios=None, scales=None, angles=None,
                    max_tile_k=512):
    pyramid_levels = list(pyramid_levels)
    if strides is None:
        strides = [2 ** x for x in pyramid_levels]
    if sizes is None:
        sizes = [2 ** (x + 2) for x in pyramid_levels]
    num_levels = len(pyramid_levels)

    img_shape = np.array(batch_imgs.shape[2:])
    img_shapes = [(img_shape + 2 ** x - 1) // (2 ** x) for x in pyramid_levels]

    # --- static host-side tables (pure index math / tiny arrays) ------------
    base_rows, coeff_blocks, k_sizes = [], [], []
    for idx in range(num_levels):
        anc = generate_anchors_np(base_size=sizes[idx], ratios=ratios,
                                  scales=scales, angles=angles)
        base_rows.append(_xyxy_to_xywh_np(anc).reshape(-1))          # (A*5,)

        H, W = int(img_shapes[idx][0]), int(img_shapes[idx][1])
        shift_x = (np.arange(0, W) + 0.5) * strides[idx]
        shift_y = (np.arange(0, H) + 0.5) * strides[idx]
        gx, gy = np.meshgrid(shift_x, shift_y)                       # (H, W)
        k = H * W
        k_sizes.append(k)
        c = np.zeros((k, num_levels + 2), dtype=np.float32)
        c[:, idx] = 1.0                                              # level one-hot
        c[:, num_levels] = gx.ravel()                                # sx
        c[:, num_levels + 1] = gy.ravel()                            # sy
        coeff_blocks.append(c)

    a5 = base_rows[0].shape[0]
    A = a5 // 5
    mask_x = (np.arange(a5) % 5 == 0).astype(np.float64)             # cx column
    mask_y = (np.arange(a5) % 5 == 1).astype(np.float64)             # cy column

    table = np.stack(base_rows + [mask_x, mask_y], axis=0)           # (L+2, A*5)
    coeff = np.concatenate(coeff_blocks, axis=0)                     # (K_total, L+2)
    k_total = int(sum(k_sizes))

    # Adaptive tile: multiple of 8 sublanes, <= max_tile_k, and sized so there
    # are ~>=8 grid tiles when the problem is big enough (v7x megacore).
    tk = min(int(max_tile_k), _round_up(k_total, 8))
    tk = max(8, min(tk, _round_up(max(k_total // 8, 1), 8)))

    out = _anchor_pallas(jnp.asarray(coeff, dtype=jnp.float32),
                         jnp.asarray(table, dtype=jnp.float32),
                         tile_k=tk)                                  # (K_total, A*5)

    # Module layout (1, K_total*A, 5): pure row-major reshape, no transpose,
    # no per-level slicing, no concat.
    return out.reshape(k_total * A, 5)[None, :, :]


# ----------------------------------------------------------------------------
# Pure-numpy reference (replicates the PyTorch module's forward, sans torch)
# ----------------------------------------------------------------------------
def anchors_forward_ref(batch_imgs_shape, pyramid_levels=(3, 4, 5, 6, 7)):
    pyramid_levels = list(pyramid_levels)
    strides = [2 ** x for x in pyramid_levels]
    sizes = [2 ** (x + 2) for x in pyramid_levels]
    img_shape = np.array(batch_imgs_shape[2:])
    img_shapes = [(img_shape + 2 ** x - 1) // (2 ** x) for x in pyramid_levels]
    all_anchors = np.zeros((0, 5)).astype(np.float32)
    for idx in range(len(pyramid_levels)):
        anchors = generate_anchors_np(base_size=sizes[idx])
        H, W = int(img_shapes[idx][0]), int(img_shapes[idx][1])
        shift_x = (np.arange(0, W) + 0.5) * strides[idx]
        shift_y = (np.arange(0, H) + 0.5) * strides[idx]
        gx, gy = np.meshgrid(shift_x, shift_y)
        shifts = np.vstack((gx.ravel(), gy.ravel(),
                            gx.ravel(), gy.ravel())).transpose()
        shifts = np.hstack((shifts, np.zeros((shifts.shape[0], 1))))
        Aa, K = anchors.shape[0], shifts.shape[0]
        shifted = (anchors.reshape((1, Aa, 5)) +
                   shifts.reshape((1, K, 5)).transpose((1, 0, 2))
                   ).reshape((K * Aa, 5))
        all_anchors = np.vstack((all_anchors, shifted))
    all_anchors = _xyxy_to_xywh_np(all_anchors)
    return np.expand_dims(all_anchors, axis=0).astype(np.float32)


if __name__ == "__main__":
    key = jax.random.PRNGKey(0)
    # Small NCHW batch; only the spatial shape is used by the module.
    batch_imgs = jax.random.normal(key, (2, 3, 16, 16), dtype=jnp.float32)

    out = anchors_forward(batch_imgs)
    out = jax.block_until_ready(out)

    ref = anchors_forward_ref(batch_imgs.shape)

    assert out.shape == ref.shape, (out.shape, ref.shape)
    assert out.dtype == jnp.float32
    np.testing.assert_allclose(np.asarray(out), ref, rtol=1e-5, atol=1e-3)

    print("KERNEL_OK")
</pallas_src>

<mosaic_0001>
module attributes {stable_mosaic.version = 11 : i64} {
  func.func @_anchor_kernel(%arg0: i32, %arg1: memref<8x7xf32, #tpu.memory_space<vmem>>, %arg2: memref<7x135xf32, #tpu.memory_space<vmem>>, %arg3: memref<8x135xf32, #tpu.memory_space<vmem>>) attributes {dimension_semantics = [#tpu.dimension_semantics<parallel>], iteration_bounds = array<i64: 1>, scalar_prefetch = 0 : i64, scratch_operands = 0 : i64, tpu.core_type = #tpu.core_type<tc>, window_params = [{transform_indices = @transform_0, window_bounds = array<i64: 8, 7>}, {pipeline_mode = #tpu.pipeline_mode<synchronous>, transform_indices = @transform_1, window_bounds = array<i64: 7, 135>}, {transform_indices = @transform_2, window_bounds = array<i64: 8, 135>}]} {
    %c0 = arith.constant 0 : index
    %c0_0 = arith.constant 0 : index
    %0 = vector.load %arg1[%c0, %c0_0] : memref<8x7xf32, #tpu.memory_space<vmem>>, vector<8x1xf32>
    %c0_1 = arith.constant 0 : index
    %c0_2 = arith.constant 0 : index
    %1 = vector.load %arg2[%c0_1, %c0_2] : memref<7x135xf32, #tpu.memory_space<vmem>>, vector<1x135xf32>
    %2 = vector.broadcast %0 : vector<8x1xf32> to vector<8x135xf32>
    %3 = vector.broadcast %1 : vector<1x135xf32> to vector<8x135xf32>
    %4 = arith.mulf %2, %3 : vector<8x135xf32>
    %c0_3 = arith.constant 0 : index
    %c1 = arith.constant 1 : index
    %5 = vector.load %arg1[%c0_3, %c1] : memref<8x7xf32, #tpu.memory_space<vmem>>, vector<8x1xf32>
    %c1_4 = arith.constant 1 : index
    %c0_5 = arith.constant 0 : index
    %6 = vector.load %arg2[%c1_4, %c0_5] : memref<7x135xf32, #tpu.memory_space<vmem>>, vector<1x135xf32>
    %7 = vector.broadcast %5 : vector<8x1xf32> to vector<8x135xf32>
    %8 = vector.broadcast %6 : vector<1x135xf32> to vector<8x135xf32>
    %9 = arith.mulf %7, %8 : vector<8x135xf32>
    %10 = arith.addf %4, %9 : vector<8x135xf32>
    %c0_6 = arith.constant 0 : index
    %c2 = arith.constant 2 : index
    %11 = vector.load %arg1[%c0_6, %c2] : memref<8x7xf32, #tpu.memory_space<vmem>>, vector<8x1xf32>
    %c2_7 = arith.constant 2 : index
    %c0_8 = arith.constant 0 : index
    %12 = vector.load %arg2[%c2_7, %c0_8] : memref<7x135xf32, #tpu.memory_space<vmem>>, vector<1x135xf32>
    %13 = vector.broadcast %11 : vector<8x1xf32> to vector<8x135xf32>
    %14 = vector.broadcast %12 : vector<1x135xf32> to vector<8x135xf32>
    %15 = arith.mulf %13, %14 : vector<8x135xf32>
    %16 = arith.addf %10, %15 : vector<8x135xf32>
    %c0_9 = arith.constant 0 : index
    %c3 = arith.constant 3 : index
    %17 = vector.load %arg1[%c0_9, %c3] : memref<8x7xf32, #tpu.memory_space<vmem>>, vector<8x1xf32>
    %c3_10 = arith.constant 3 : index
    %c0_11 = arith.constant 0 : index
    %18 = vector.load %arg2[%c3_10, %c0_11] : memref<7x135xf32, #tpu.memory_space<vmem>>, vector<1x135xf32>
    %19 = vector.broadcast %17 : vector<8x1xf32> to vector<8x135xf32>
    %20 = vector.broadcast %18 : vector<1x135xf32> to vector<8x135xf32>
    %21 = arith.mulf %19, %20 : vector<8x135xf32>
    %22 = arith.addf %16, %21 : vector<8x135xf32>
    %c0_12 = arith.constant 0 : index
    %c4 = arith.constant 4 : index
    %23 = vector.load %arg1[%c0_12, %c4] : memref<8x7xf32, #tpu.memory_space<vmem>>, vector<8x1xf32>
    %c4_13 = arith.constant 4 : index
    %c0_14 = arith.constant 0 : index
    %24 = vector.load %arg2[%c4_13, %c0_14] : memref<7x135xf32, #tpu.memory_space<vmem>>, vector<1x135xf32>
    %25 = vector.broadcast %23 : vector<8x1xf32> to vector<8x135xf32>
    %26 = vector.broadcast %24 : vector<1x135xf32> to vector<8x135xf32>
    %27 = arith.mulf %25, %26 : vector<8x135xf32>
    %28 = arith.addf %22, %27 : vector<8x135xf32>
    %c0_15 = arith.constant 0 : index
    %c5 = arith.constant 5 : index
    %29 = vector.load %arg1[%c0_15, %c5] : memref<8x7xf32, #tpu.memory_space<vmem>>, vector<8x1xf32>
    %c5_16 = arith.constant 5 : index
    %c0_17 = arith.constant 0 : index
    %30 = vector.load %arg2[%c5_16, %c0_17] : memref<7x135xf32, #tpu.memory_space<vmem>>, vector<1x135xf32>
    %31 = vector.broadcast %29 : vector<8x1xf32> to vector<8x135xf32>
    %32 = vector.broadcast %30 : vector<1x135xf32> to vector<8x135xf32>
    %33 = arith.mulf %31, %32 : vector<8x135xf32>
    %34 = arith.addf %28, %33 : vector<8x135xf32>
    %c0_18 = arith.constant 0 : index
    %c6 = arith.constant 6 : index
    %35 = vector.load %arg1[%c0_18, %c6] : memref<8x7xf32, #tpu.memory_space<vmem>>, vector<8x1xf32>
    %c6_19 = arith.constant 6 : index
    %c0_20 = arith.constant 0 : index
    %36 = vector.load %arg2[%c6_19, %c0_20] : memref<7x135xf32, #tpu.memory_space<vmem>>, vector<1x135xf32>
    %37 = vector.broadcast %35 : vector<8x1xf32> to vector<8x135xf32>
    %38 = vector.broadcast %36 : vector<1x135xf32> to vector<8x135xf32>
    %39 = arith.mulf %37, %38 : vector<8x135xf32>
    %40 = arith.addf %34, %39 : vector<8x135xf32>
    %c0_21 = arith.constant 0 : index
    %c0_22 = arith.constant 0 : index
    %41 = vector.load %arg3[%c0_21, %c0_22] : memref<8x135xf32, #tpu.memory_space<vmem>>, vector<8x135xf32>
    tpu.vector_store %arg3[%c0_21, %c0_22], %40 {strides = array<i32>} : memref<8x135xf32, #tpu.memory_space<vmem>>, vector<8x135xf32>,
    return
  }
  func.func @transform_0(%arg0: i32) -> (i32, i32) {
    %c0_i32 = arith.constant 0 : i32
    %c0_i32_0 = arith.constant 0 : i32
    return %arg0, %c0_i32 : i32, i32
  }
  func.func @transform_1(%arg0: i32) -> (i32, i32) {
    %c0_i32 = arith.constant 0 : i32
    %c0_i32_0 = arith.constant 0 : i32
    %c0_i32_1 = arith.constant 0 : i32
    return %c0_i32, %c0_i32_0 : i32, i32
  }
  func.func @transform_2(%arg0: i32) -> (i32, i32) {
    %c0_i32 = arith.constant 0 : i32
    %c0_i32_0 = arith.constant 0 : i32
    return %arg0, %c0_i32 : i32, i32
  }
}

</mosaic_0001>

<bundles_post_ra>
// kernel: tpu_custom_call.1
= control target key start
LH: loop header
LB: loop body
LE: loop exit
PB: predicated region body
PF: predicated region fallthrough
CT: control target
= control target key end

     0   :  { %7 = vsyncpa [#allocation3], 0  ;;  %s352_s0 = inlined_call_operand.hbm [shape: f32[8,7], index: 0, kind: input, shape index: {}]   ;;  %s353_s1 = inlined_call_operand.hbm [shape: f32[7,135], index: 1, kind: input, shape index: {}]   ;;  %s354_s2 = inlined_call_operand.hbm [shape: f32[8,135], index: 2, kind: output, shape index: {}]  }
   0x1   :  { %8 = vsyncpa [#allocation6], 0 }
   0x2   :  { %9 = vsyncpa [#allocation4], 0  ;;  %s291_s9 = smov [#allocation2]   ;;  %s292_s11 = smov [#allocation5]  }
   0x3   :  { %s16_s10 = sshll.u32 %s291_s9, 4  ;;  %s26_s12 = sshll.u32 %s292_s11, 4  ;;  %s17_s10 = int_to_ptr.vmem [resolvable:$true] %s16_s10  ;;  %s27_s12 = int_to_ptr.vmem [resolvable:$true] %s26_s12 }
   0x4   :  { %s219_s15 = scalar_lea.hbm %s352_s0, 128 }
   0x5   :  { %p220_p0 = scmp.ne.s32.totalorder %s352_s0, %s219_s15  ;;  %p223_p1 = scmp.lt.u32.totalorder %s219_s15, %s352_s0 }
   0x7   :  { %p225_p2 = pnand %p223_p1, %p220_p0 }
   0x9   :  { %228 = shalt.err (!%p225_p2)
}
   0xa   :  { %s229_s20 = scalar_lea.vmem %s17_s10, 128  ;;  %p234_p4 = scmp.lt.s32.totalorder %s17_s10, %s17_s10 }
   0xb   :  { %p230_p3 = scmp.ne.s32.totalorder %s17_s10, %s229_s20  ;;  %p235_p5 = scmp.lt.s32.totalorder %s229_s20, %s229_s20 }
   0xd   :  { %p236_p6 = por %p235_p5, %p234_p4 }
   0xf   :  { %p237_p7 = pnand %p236_p6, %p230_p3 }
  0x11   :  { %240 = shalt.err (!%p237_p7)
}
  0x12   :  { %19 = dma.hbm_to_vmem [thread:$0]  %s352_s0, 128, %s17_s10, [#allocation3]  }
  0x13   :  { %s241_s25 = scalar_lea.hbm %s353_s1, 256 }
  0x14   :  { %p242_p8 = scmp.ne.s32.totalorder %s353_s1, %s241_s25  ;;  %p245_p9 = scmp.lt.u32.totalorder %s241_s25, %s353_s1 }
  0x16   :  { %p247_p10 = pnand %p245_p9, %p242_p8 }
  0x18   :  { %250 = shalt.err (!%p247_p10)
}
  0x19   :  { %s251_s30 = scalar_lea.vmem %s27_s12, 256  ;;  %p256_p12 = scmp.lt.s32.totalorder %s27_s12, %s27_s12 }
  0x1a   :  { %p252_p11 = scmp.ne.s32.totalorder %s27_s12, %s251_s30  ;;  %p257_p13 = scmp.lt.s32.totalorder %s251_s30, %s251_s30 }
  0x1c   :  { %p258_p0 = por %p257_p13, %p256_p12 }
  0x1e   :  { %p259_p1 = pnand %p258_p0, %p252_p11 }
  0x20   :  { %262 = shalt.err (!%p259_p1)
}
  0x21   :  { %29 = dma.hbm_to_vmem [thread:$0]  %s353_s1, 256, %s27_s12, [#allocation6]  }
  0x22   :  { %285 = dma.done.wait [#allocation3], 128  }
  0x23   :  { %286 = vsyncadd [#allocation3], 4294967168 }
  0x24   :  { %287 = dma.done.wait [#allocation6], 256  }
  0x25   :  { %288 = vsyncadd [#allocation6], 4294967040  ;;  %v293_v0 = vmov 2   ;;  %v294_v1 = vmov 0   ;;  %v36_v2 = vld [vmem:[#allocation2] sm:$0xff]  ;;  %v295_v3 = vmov 3   ;;  %v44_v8 = vlaneseq }
  0x26   :  { %213 = vset.pattern.permute.xlu1 %v293_v0  ;;  %211 = vset.pattern.permute.xlu0 %v294_v1  ;;  %v296_v4 = vmov 1   ;;  %v297_v5 = vmov 4   ;;  %v298_v6 = vmov 5   ;;  %v299_v7 = vmov 6   ;;  %s300_s1 = smov [#allocation7]  }
  0x27   :  { %80 = vperm.xlu1 %213, %v36_v2   ;;  %40 = vperm.xlu0 %211, %v36_v2   ;;  %v45_v9 = vshrl.u32 %v44_v8, 7  ;;  %v37_v12 = vld [vmem:[#allocation5] ss:$8 sm:$0x3]  ;;  %s191_s4 = sshll.u32 %s300_s1, 4  ;;  %vm183_vm0 = vcmask 56320   ;;  %s192_s4 = int_to_ptr.vmem [resolvable:$true] %s191_s4 }
  0x28   :  { %v57_v13 = vld [vmem:[#allocation5 + $0x1] ss:$8 sm:$0x3]  ;;  %v78_v16 = vld [vmem:[#allocation5 + $0x2] ss:$8 sm:$0x3]  ;;  %p268_p3 = scmp.lt.s32.totalorder %s192_s4, %s192_s4 }
  0x29   :  { %v46_v10 = vsub.s32 0, %v45_v9  ;;  %v50_v11 = vsub.s32 1, %v45_v9  ;;  %v99_v19 = vld [vmem:[#allocation5 + $0x3] ss:$8 sm:$0x3]  ;;  %s263_s5 = scalar_lea.vmem %s192_s4, 256 }
  0x2a   :  { %v120_v24 = vld [vmem:[#allocation5 + $0x4] ss:$8 sm:$0x3]  ;;  %v141_v25 = vld [vmem:[#allocation5 + $0x5] ss:$8 sm:$0x3]  ;;  %p264_p2 = scmp.ne.s32.totalorder %s192_s4, %s263_s5  ;;  %p269_p4 = scmp.lt.s32.totalorder %s263_s5, %s263_s5 }
  0x2b   :  { %214 = vset.pattern.permute.xlu1 %v295_v3  ;;  %212 = vset.pattern.permute.xlu0 %v296_v4  ;;  %v47_v17 = vrot.slane %v37_v12, %v46_v10  ;;  %v51_v18 = vrot.slane %v37_v12, %v50_v11  ;;  %v66_v20 = vrot.slane %v57_v13, %v46_v10  ;;  %v162_v42 = vld [vmem:[#allocation5 + $0x6] ss:$8 sm:$0x3] }
  0x2c   :  { %101 = vperm.xlu1 %214, %v36_v2   ;;  %59 = vperm.xlu0 %212, %v36_v2   ;;  %v70_v21 = vrot.slane %v57_v13, %v50_v11  ;;  %v87_v22 = vrot.slane %v78_v16, %v46_v10  ;;  %v91_v23 = vrot.slane %v78_v16, %v50_v11  ;;  %p270_p5 = por %p269_p4, %p268_p3 }
  0x2d   :  { %v108_v26 = vrot.slane %v99_v19, %v46_v10  ;;  %v112_v27 = vrot.slane %v99_v19, %v50_v11  ;;  %v129_v34 = vrot.slane %v120_v24, %v46_v10  ;;  %v133_v35 = vrot.slane %v120_v24, %v50_v11 }
  0x2e   :  { %v150_v36 = vrot.slane %v141_v25, %v46_v10  ;;  %v154_v37 = vrot.slane %v141_v25, %v50_v11  ;;  %v171_v51 = vrot.slane %v162_v42, %v46_v10  ;;  %v175_v52 = vrot.slane %v162_v42, %v50_v11  ;;  %p271_p6 = pnand %p270_p5, %p264_p2 }
  0x30   :  { %215 = vset.pattern.permute.xlu1 %v297_v5  ;;  %216 = vset.pattern.permute.xlu0 %v298_v6 }
  0x31   :  { %122 = vperm.xlu1 %215, %v36_v2   ;;  %143 = vperm.xlu0 %216, %v36_v2  }
  0x35   :  { %217 = vset.pattern.permute.xlu1 %v299_v7  ;;  %218 = vset.pattern.permute.xlu0 %v299_v7 }
  0x36   :  { %164 = vperm.xlu1 %217, %v36_v2  }
  0xa6   :  { %v81_v14 = vpop.permute.xlu1 %80  ;;  %v41_v15 = vpop.permute.xlu0 %40 }
  0xa7   :  { %v54_v30 = vmul.f32 %v47_v17, %v41_v15  ;;  %v55_v31 = vmul.f32 %v51_v18, %v41_v15  ;;  %v94_v38 = vmul.f32 %v87_v22, %v81_v14  ;;  %v95_v39 = vmul.f32 %v91_v23, %v81_v14 }
  0xab   :  { %v102_v28 = vpop.permute.xlu1 %101  ;;  %v60_v29 = vpop.permute.xlu0 %59 }
  0xac   :  { %v73_v32 = vmul.f32 %v66_v20, %v60_v29  ;;  %v74_v33 = vmul.f32 %v70_v21, %v60_v29  ;;  %v115_v43 = vmul.f32 %v108_v26, %v102_v28  ;;  %v116_v44 = vmul.f32 %v112_v27, %v102_v28 }
  0xae   :  { %v75_v40 = vadd.f32 %v73_v32, %v54_v30  ;;  %v76_v41 = vadd.f32 %v74_v33, %v55_v31 }
  0xb0   :  { %v96_v45 = vadd.f32 %v94_v38, %v75_v40  ;;  %v97_v46 = vadd.f32 %v95_v39, %v76_v41  ;;  %v123_v47 = vpop.permute.xlu1 %122  ;;  %v144_v48 = vpop.permute.xlu0 %143 }
  0xb1   :  { %v136_v49 = vmul.f32 %v129_v34, %v123_v47  ;;  %v137_v50 = vmul.f32 %v133_v35, %v123_v47  ;;  %v157_v55 = vmul.f32 %v150_v36, %v144_v48  ;;  %v158_v56 = vmul.f32 %v154_v37, %v144_v48 }
  0xb2   :  { %v117_v53 = vadd.f32 %v115_v43, %v96_v45  ;;  %v118_v54 = vadd.f32 %v116_v44, %v97_v46 }
  0xb4   :  { %v138_v57 = vadd.f32 %v136_v49, %v117_v53  ;;  %v139_v58 = vadd.f32 %v137_v50, %v118_v54 }
  0xb5   :  { %v165_v59 = vpop.permute.xlu1 %164 }
  0xb6   :  { %v159_v60 = vadd.f32 %v157_v55, %v138_v57  ;;  %v160_v61 = vadd.f32 %v158_v56, %v139_v58  ;;  %v178_v62 = vmul.f32 %v171_v51, %v165_v59  ;;  %v179_v63 = vmul.f32 %v175_v52, %v165_v59 }
  0xb8   :  { %v180_v0 = vadd.f32 %v178_v62, %v159_v60  ;;  %v181_v1 = vadd.f32 %v179_v63, %v160_v61 }
  0xba   :  { %182 = vst [vmem:[#allocation7] sm:$0xff] %v180_v0  ;;  %184 = vst.msk [vmem:[#allocation7 + $0x8] sm:$0xff] %vm183_vm0, %v181_v1 }
  0xbb   :  { %274 = shalt.err (!%p271_p6)
}
  0xbc   :  { %s275_s8 = scalar_lea.hbm %s354_s2, 256 }
  0xbd   :  { %p276_p7 = scmp.ne.s32.totalorder %s354_s2, %s275_s8  ;;  %p279_p8 = scmp.lt.u32.totalorder %s275_s8, %s354_s2 }
  0xbf   :  { %p281_p9 = pnand %p279_p8, %p276_p7 }
  0xc1   :  { %284 = shalt.err (!%p281_p9)
}
  0xc2   :  { %194 = dma.vmem_to_hbm [thread:$0]  %s192_s4, 256, %s354_s2, [#allocation4]  }
  0xc3   :  { %289 = dma.done.wait [#allocation4], 256  }
  0xc4   :  { %290 = vsyncadd [#allocation4], 4294967040 }
  0xc5   :  { %198 = vsyncpa [#allocation3], 1 }
  0xc6   :  { %199 = vsyncpa [#allocation6], 1 }
  0xc7   :  { %200 = vsyncpa [#allocation4], 1 }

</bundles_post_ra>
